<compile_context>
chip_gen: v7x
topology: tpu7x:2x2x1
jax: 0.10.0
libtpu: 0.0.40
codegen_flags: <defaults>
</compile_context>

<pallas_src>
import jax
import jax.numpy as jnp
from jax.experimental import pallas as pl
from jax.experimental.pallas import tpu as pltpu

FEATURE_D = 512
OUT_D = 400


def _round_up(n, m):
    return ((n + m - 1) // m) * m


def prepare_generate_word_params(weight_pt, bias_pt):
    """One-time parameter prep (hoisted out of the per-call path).

    weight_pt: (400, 512) f32, PyTorch nn.Linear layout (out_features, in_features).
    bias_pt:   (400,) f32.
    Returns (w_k, b_k): w_k is (512, 400) bf16 so the kernel computes x @ w_k,
    b_k is (1, 400) f32 for broadcasting over the batch tile.
    """
    w_k = jnp.asarray(weight_pt).T.astype(jnp.bfloat16)           # (512, 400)
    b_k = jnp.asarray(bias_pt, dtype=jnp.float32).reshape(1, OUT_D)
    return w_k, b_k


def linear_relu_kernel(x_ref, w_ref, b_ref, o_ref):
    # In-kernel bf16 cast of the activations (hidden under the DMA), MXU
    # matmul with f32 accumulation, bias + ReLU in f32 on the VPU.
    x_bf = x_ref[...].astype(jnp.bfloat16)
    acc = jnp.dot(x_bf, w_ref[...], preferred_element_type=jnp.float32)
    o_ref[...] = jnp.maximum(acc + b_ref[...], 0.0).astype(o_ref.dtype)


def _pick_batch_tile(B, tm_max):
    # Enough tiles to cover B at <= tm_max rows each; at least 2 tiles for
    # large B so a dual-TensorCore chip (v7x) has parallel work.  Tiles are
    # balanced so an unlucky B (e.g. 520) doesn't leave a tiny ragged tail.
    n_tiles = max(-(-B // tm_max), 2 if B >= 512 else 1)
    tm = min(tm_max, _round_up(-(-B // n_tiles), 8))
    return max(tm, 8)


def generate_word_forward(x, w_k, b_k, *, tm=1024):
    """x: (B, 512) f32; w_k: (512, 400) bf16; b_k: (1, 400) f32 -> (B, 400) f32."""
    B = x.shape[0]
    tm_eff = _pick_batch_tile(B, tm)
    grid = (pl.cdiv(B, tm_eff),)  # ragged last block is clipped by Pallas

    return pl.pallas_call(
        linear_relu_kernel,
        out_shape=jax.ShapeDtypeStruct((B, OUT_D), jnp.float32),
        grid=grid,
        in_specs=[
            # x: tiled over the batch axis (f32 in HBM, bf16 cast in-kernel).
            pl.BlockSpec((tm_eff, FEATURE_D), lambda i: (i, 0)),
            # W: constant block -> stays resident in VMEM across grid steps.
            pl.BlockSpec((FEATURE_D, OUT_D), lambda i: (0, 0)),
            # bias: constant block.
            pl.BlockSpec((1, OUT_D), lambda i: (0, 0)),
        ],
        out_specs=pl.BlockSpec((tm_eff, OUT_D), lambda i: (i, 0)),
        compiler_params=pltpu.CompilerParams(
            # Batch axis is independent -> shard across TensorCores on v7x.
            dimension_semantics=("parallel",),
            vmem_limit_bytes=48 << 20,
        ),
    )(x, w_k, b_k)


if __name__ == "__main__":
    key = jax.random.PRNGKey(0)
    kx, kw, kb = jax.random.split(key, 3)

    B = 8  # small batch
    x = jax.random.normal(kx, (B, FEATURE_D), dtype=jnp.float32)

    # Deterministic parameter init mimicking nn.Linear's uniform(-1/sqrt(in), 1/sqrt(in)),
    # stored in the PyTorch (out_features, in_features) layout.
    bound = 1.0 / (FEATURE_D ** 0.5)
    w_pt = jax.random.uniform(kw, (OUT_D, FEATURE_D), dtype=jnp.float32,
                              minval=-bound, maxval=bound)
    b_pt = jax.random.uniform(kb, (OUT_D,), dtype=jnp.float32,
                              minval=-bound, maxval=bound)

    # One-time parameter preparation (not in the per-call path).
    w_k, b_k = prepare_generate_word_params(w_pt, b_pt)
    w_k, b_k = jax.block_until_ready((w_k, b_k))

    out = generate_word_forward(x, w_k, b_k)
    out = jax.block_until_ready(out)

    # Reference check against plain JAX f32 (tolerance relaxed for bf16 matmul inputs).
    ref = jnp.maximum(x @ w_pt.T + b_pt, 0.0)
    assert out.shape == (B, OUT_D)
    assert jnp.allclose(out, ref, atol=2e-2, rtol=2e-2), (
        float(jnp.max(jnp.abs(out - ref))))

    print("KERNEL_OK")
</pallas_src>

<mosaic_0001>
module attributes {stable_mosaic.version = 11 : i64} {
  func.func @linear_relu_kernel(%arg0: i32, %arg1: memref<8x512xf32, #tpu.memory_space<vmem>>, %arg2: memref<512x400xbf16, #tpu.memory_space<vmem>>, %arg3: memref<1x400xf32, #tpu.memory_space<vmem>>, %arg4: memref<8x400xf32, #tpu.memory_space<vmem>>) attributes {dimension_semantics = [#tpu.dimension_semantics<parallel>], iteration_bounds = array<i64: 1>, scalar_prefetch = 0 : i64, scratch_operands = 0 : i64, tpu.core_type = #tpu.core_type<tc>, window_params = [{transform_indices = @transform_0, window_bounds = array<i64: 8, 512>}, {pipeline_mode = #tpu.pipeline_mode<synchronous>, transform_indices = @transform_1, window_bounds = array<i64: 512, 400>}, {pipeline_mode = #tpu.pipeline_mode<synchronous>, transform_indices = @transform_2, window_bounds = array<i64: 1, 400>}, {transform_indices = @transform_3, window_bounds = array<i64: 8, 400>}]} {
    %c0 = arith.constant 0 : index
    %c0_0 = arith.constant 0 : index
    %0 = vector.load %arg1[%c0, %c0_0] : memref<8x512xf32, #tpu.memory_space<vmem>>, vector<8x512xf32>
    %1 = arith.truncf %0 : vector<8x512xf32> to vector<8x512xbf16>
    %c0_1 = arith.constant 0 : index
    %c0_2 = arith.constant 0 : index
    %2 = vector.load %arg2[%c0_1, %c0_2] : memref<512x400xbf16, #tpu.memory_space<vmem>>, vector<512x400xbf16>
    %cst = arith.constant dense<0.000000e+00> : vector<8x400xf32>
    %3 = tpu.matmul %1, %2, %cst {dimension_numbers = #tpu.dot_dimension_numbers<[1], [0], [0], [1], [0, 0, 1, 1], [], []>} : vector<8x512xbf16>, vector<512x400xbf16>, vector<8x400xf32> -> vector<8x400xf32>
    %c0_3 = arith.constant 0 : index
    %c0_4 = arith.constant 0 : index
    %4 = vector.load %arg3[%c0_3, %c0_4] : memref<1x400xf32, #tpu.memory_space<vmem>>, vector<1x400xf32>
    %5 = vector.broadcast %4 : vector<1x400xf32> to vector<8x400xf32>
    %6 = arith.addf %3, %5 : vector<8x400xf32>
    %cst_5 = arith.constant 0.000000e+00 : f32
    %7 = vector.broadcast %cst_5 : f32 to vector<8x400xf32>
    %8 = arith.maximumf %6, %7 : vector<8x400xf32>
    %c0_6 = arith.constant 0 : index
    %c0_7 = arith.constant 0 : index
    %9 = vector.load %arg4[%c0_6, %c0_7] : memref<8x400xf32, #tpu.memory_space<vmem>>, vector<8x400xf32>
    tpu.vector_store %arg4[%c0_6, %c0_7], %8 {strides = array<i32>} : memref<8x400xf32, #tpu.memory_space<vmem>>, vector<8x400xf32>,
    return
  }
  func.func @transform_0(%arg0: i32) -> (i32, i32) {
    %c0_i32 = arith.constant 0 : i32
    %c0_i32_0 = arith.constant 0 : i32
    return %arg0, %c0_i32 : i32, i32
  }
  func.func @transform_1(%arg0: i32) -> (i32, i32) {
    %c0_i32 = arith.constant 0 : i32
    %c0_i32_0 = arith.constant 0 : i32
    %c0_i32_1 = arith.constant 0 : i32
    return %c0_i32, %c0_i32_0 : i32, i32
  }
  func.func @transform_2(%arg0: i32) -> (i32, i32) {
    %c0_i32 = arith.constant 0 : i32
    %c0_i32_0 = arith.constant 0 : i32
    %c0_i32_1 = arith.constant 0 : i32
    return %c0_i32, %c0_i32_0 : i32, i32
  }
  func.func @transform_3(%arg0: i32) -> (i32, i32) {
    %c0_i32 = arith.constant 0 : i32
    %c0_i32_0 = arith.constant 0 : i32
    return %arg0, %c0_i32 : i32, i32
  }
}

</mosaic_0001>

<bundles_post_ra>
// kernel: tpu_custom_call.1
= control target key start
LH: loop header
LB: loop body
LE: loop exit
PB: predicated region body
PF: predicated region fallthrough
CT: control target
= control target key end

     0   :  { %s1789_s0 = inlined_call_operand.vmem [shape: f32[8,512], index: 0, kind: input, shape index: {}]   ;;  %s1790_s1 = inlined_call_operand.vmem [shape: bf16[512,400], index: 1, kind: input, shape index: {}]   ;;  %s1791_s2 = inlined_call_operand.vmem [shape: f32[1,400], index: 2, kind: input, shape index: {}]   ;;  %s1792_s3 = inlined_call_operand.hbm [shape: f32[8,400], index: 3, kind: output, shape index: {}]  }
   0x1   :  { %v1141_v0 = vld [vmem:[%s1790_s1 + $0x4] ss:$16 sps:$4 sm:$0xff]   ;;  %v1143_v1 = vld [vmem:[%s1790_s1 + $0xc] ss:$16 sps:$4 sm:$0xff]   ;;  %v1145_v2 = vld [vmem:[%s1790_s1] ss:$16 sps:$4 sm:$0xff]  }
   0x2   :  { %813 = vmatprep.subr.bf16.mxu0 %v1141_v0  ;;  %v1146_v3 = vld [vmem:[%s1790_s1 + $0x8] ss:$16 sps:$4 sm:$0xff]   ;;  %895 = vmatprep.subr.bf16.mxu1 %v1143_v1  ;;  %v1147_v4 = vld [vmem:[%s1790_s1 + $0x24] ss:$16 sps:$4 sm:$0xff]   ;;  %v1149_v5 = vld [vmem:[%s1790_s1 + $0x2c] ss:$16 sps:$4 sm:$0xff]  }
   0x3   :  { %814 = vmatpush1.bf16.msra.mxu0 %v1145_v2  ;;  %896 = vmatpush1.bf16.msra.mxu1 %v1146_v3  ;;  %v1151_v6 = vld [vmem:[%s1790_s1 + $0x20] ss:$16 sps:$4 sm:$0xff]   ;;  %v1152_v7 = vld [vmem:[%s1790_s1 + $0x28] ss:$16 sps:$4 sm:$0xff]   ;;  %v1153_v8 = vld [vmem:[%s1790_s1 + $0x44] ss:$16 sps:$4 sm:$0xff]  }
   0x4   :  { %815 = vmatprep.subr.bf16.mxu0 %v1147_v4  ;;  %897 = vmatprep.subr.bf16.mxu1 %v1149_v5  ;;  %v1155_v9 = vld [vmem:[%s1790_s1 + $0x4c] ss:$16 sps:$4 sm:$0xff]   ;;  %v1157_v10 = vld [vmem:[%s1790_s1 + $0x40] ss:$16 sps:$4 sm:$0xff]   ;;  %v1158_v11 = vld [vmem:[%s1790_s1 + $0x48] ss:$16 sps:$4 sm:$0xff]  }
   0x5   :  { %v1159_v12 = vld [vmem:[%s1790_s1 + $0x64] ss:$16 sps:$4 sm:$0xff]   ;;  %v1161_v13 = vld [vmem:[%s1790_s1 + $0x6c] ss:$16 sps:$4 sm:$0xff]   ;;  %v1163_v14 = vld [vmem:[%s1790_s1 + $0x60] ss:$16 sps:$4 sm:$0xff]  }
   0x6   :  { %v1164_v15 = vld [vmem:[%s1790_s1 + $0x68] ss:$16 sps:$4 sm:$0xff]   ;;  %v1165_v16 = vld [vmem:[%s1790_s1 + $0x84] ss:$16 sps:$4 sm:$0xff]   ;;  %v1167_v17 = vld [vmem:[%s1790_s1 + $0x8c] ss:$16 sps:$4 sm:$0xff]  }
   0x7   :  { %816 = vmatpush1.bf16.msra.mxu0 %v1151_v6  ;;  %898 = vmatpush1.bf16.msra.mxu1 %v1152_v7  ;;  %v1169_v18 = vld [vmem:[%s1790_s1 + $0x80] ss:$16 sps:$4 sm:$0xff]   ;;  %v1170_v19 = vld [vmem:[%s1790_s1 + $0x88] ss:$16 sps:$4 sm:$0xff]   ;;  %v1171_v20 = vld [vmem:[%s1790_s1 + $0xa4] ss:$16 sps:$4 sm:$0xff]  }
   0x8   :  { %817 = vmatprep.subr.bf16.mxu0 %v1153_v8  ;;  %899 = vmatprep.subr.bf16.mxu1 %v1155_v9  ;;  %v1173_v21 = vld [vmem:[%s1790_s1 + $0xac] ss:$16 sps:$4 sm:$0xff]   ;;  %v1175_v22 = vld [vmem:[%s1790_s1 + $0xa0] ss:$16 sps:$4 sm:$0xff]   ;;  %v1176_v23 = vld [vmem:[%s1790_s1 + $0xa8] ss:$16 sps:$4 sm:$0xff]  }
   0x9   :  { %v1177_v24 = vld [vmem:[%s1790_s1 + $0xc4] ss:$16 sps:$4 sm:$0xff]   ;;  %v1179_v25 = vld [vmem:[%s1790_s1 + $0xcc] ss:$16 sps:$4 sm:$0xff]   ;;  %v1181_v26 = vld [vmem:[%s1790_s1 + $0xc0] ss:$16 sps:$4 sm:$0xff]  }
   0xa   :  { %v1182_v27 = vld [vmem:[%s1790_s1 + $0xc8] ss:$16 sps:$4 sm:$0xff]   ;;  %v1183_v28 = vld [vmem:[%s1790_s1 + $0xe4] ss:$16 sps:$4 sm:$0xff]   ;;  %v1185_v29 = vld [vmem:[%s1790_s1 + $0xec] ss:$16 sps:$4 sm:$0xff]  }
   0xb   :  { %818 = vmatpush1.bf16.msra.mxu0 %v1157_v10  ;;  %900 = vmatpush1.bf16.msra.mxu1 %v1158_v11  ;;  %v1187_v30 = vld [vmem:[%s1790_s1 + $0xe0] ss:$16 sps:$4 sm:$0xff]   ;;  %v1188_v31 = vld [vmem:[%s1790_s1 + $0xe8] ss:$16 sps:$4 sm:$0xff]   ;;  %v1189_v32 = vld [vmem:[%s1790_s1 + $0x104] ss:$16 sps:$4 sm:$0xff]  }
   0xc   :  { %819 = vmatprep.subr.bf16.mxu0 %v1159_v12  ;;  %901 = vmatprep.subr.bf16.mxu1 %v1161_v13  ;;  %v1191_v33 = vld [vmem:[%s1790_s1 + $0x10c] ss:$16 sps:$4 sm:$0xff]   ;;  %v1193_v34 = vld [vmem:[%s1790_s1 + $0x100] ss:$16 sps:$4 sm:$0xff]   ;;  %v1194_v35 = vld [vmem:[%s1790_s1 + $0x108] ss:$16 sps:$4 sm:$0xff]  }
   0xd   :  { %v1195_v36 = vld [vmem:[%s1790_s1 + $0x124] ss:$16 sps:$4 sm:$0xff]   ;;  %v1197_v37 = vld [vmem:[%s1790_s1 + $0x12c] ss:$16 sps:$4 sm:$0xff]   ;;  %v1199_v38 = vld [vmem:[%s1790_s1 + $0x120] ss:$16 sps:$4 sm:$0xff]  }
   0xe   :  { %v1200_v39 = vld [vmem:[%s1790_s1 + $0x128] ss:$16 sps:$4 sm:$0xff]   ;;  %v1201_v40 = vld [vmem:[%s1790_s1 + $0x144] ss:$16 sps:$4 sm:$0xff]   ;;  %v1203_v41 = vld [vmem:[%s1790_s1 + $0x14c] ss:$16 sps:$4 sm:$0xff]  }
   0xf   :  { %820 = vmatpush1.bf16.msra.mxu0 %v1163_v14  ;;  %902 = vmatpush1.bf16.msra.mxu1 %v1164_v15  ;;  %v1205_v42 = vld [vmem:[%s1790_s1 + $0x140] ss:$16 sps:$4 sm:$0xff]   ;;  %v1206_v43 = vld [vmem:[%s1790_s1 + $0x148] ss:$16 sps:$4 sm:$0xff]   ;;  %v1207_v44 = vld [vmem:[%s1790_s1 + $0x164] ss:$16 sps:$4 sm:$0xff]  }
  0x10   :  { %821 = vmatprep.subr.bf16.mxu0 %v1165_v16  ;;  %903 = vmatprep.subr.bf16.mxu1 %v1167_v17  ;;  %v1209_v45 = vld [vmem:[%s1790_s1 + $0x16c] ss:$16 sps:$4 sm:$0xff]   ;;  %v1211_v47 = vld [vmem:[%s1790_s1 + $0x160] ss:$16 sps:$4 sm:$0xff]   ;;  %v1212_v49 = vld [vmem:[%s1790_s1 + $0x168] ss:$16 sps:$4 sm:$0xff]  }
  0x11   :  { %v16_v46 = vld [vmem:[%s1789_s0 + $0x8] sm:$0xff]  ;;  %v1213_v50 = vld [vmem:[%s1790_s1 + $0x184] ss:$16 sps:$4 sm:$0xff]   ;;  %v1217_v52 = vld [vmem:[%s1790_s1 + $0x180] ss:$16 sps:$4 sm:$0xff]  }
  0x12   :  { %v20_v48 = vpack.c.bf16 %v16_v46, %v16_v46  ;;  %v1215_v51 = vld [vmem:[%s1790_s1 + $0x18c] ss:$16 sps:$4 sm:$0xff]   ;;  %v1218_v53 = vld [vmem:[%s1790_s1 + $0x188] ss:$16 sps:$4 sm:$0xff]   ;;  %v1219_v54 = vld [vmem:[%s1790_s1 + $0x1a4] ss:$16 sps:$4 sm:$0xff]  }
  0x13   :  { %822 = vmatpush1.bf16.msra.mxu0 %v1169_v18  ;;  %904 = vmatpush1.bf16.msra.mxu1 %v1170_v19  ;;  %v1221_v55 = vld [vmem:[%s1790_s1 + $0x1ac] ss:$16 sps:$4 sm:$0xff]   ;;  %v1223_v56 = vld [vmem:[%s1790_s1 + $0x1a0] ss:$16 sps:$4 sm:$0xff]   ;;  %v1224_v57 = vld [vmem:[%s1790_s1 + $0x1a8] ss:$16 sps:$4 sm:$0xff]  }
  0x14   :  { %823 = vmatprep.subr.bf16.mxu0 %v1171_v20  ;;  %905 = vmatprep.subr.bf16.mxu1 %v1173_v21  ;;  %v1225_v58 = vld [vmem:[%s1790_s1 + $0x1c4] ss:$16 sps:$4 sm:$0xff]   ;;  %v1227_v59 = vld [vmem:[%s1790_s1 + $0x1cc] ss:$16 sps:$4 sm:$0xff]   ;;  %v1229_v60 = vld [vmem:[%s1790_s1 + $0x1c0] ss:$16 sps:$4 sm:$0xff]  }
  0x15   :  { %845 = vmatprep.mubr.bf16.mxu0 %v20_v48  ;;  %927 = vmatprep.mubr.bf16.mxu1 %v20_v48  ;;  %v1230_v61 = vld [vmem:[%s1790_s1 + $0x1c8] ss:$16 sps:$4 sm:$0xff]   ;;  %v1231_v62 = vld [vmem:[%s1790_s1 + $0x1e4] ss:$16 sps:$4 sm:$0xff]   ;;  %v1233_v63 = vld [vmem:[%s1790_s1 + $0x1ec] ss:$16 sps:$4 sm:$0xff]  }
  0x16   :  { %v1235_v0 = vld [vmem:[%s1790_s1 + $0x1e0] ss:$16 sps:$4 sm:$0xff]   ;;  %v1236_v1 = vld [vmem:[%s1790_s1 + $0x1e8] ss:$16 sps:$4 sm:$0xff]   ;;  %v1239_v3 = vld [vmem:[%s1790_s1 + $0x204] ss:$16 sps:$4 sm:$0xff]  }
  0x17   :  { %824 = vmatpush1.bf16.msra.mxu0 %v1175_v22  ;;  %906 = vmatpush1.bf16.msra.mxu1 %v1176_v23  ;;  %v15_v2 = vld [vmem:[%s1789_s0] sm:$0xff]  ;;  %v1242_v4 = vld [vmem:[%s1790_s1 + $0x20c] ss:$16 sps:$4 sm:$0xff]   ;;  %v1240_v7 = vld [vmem:[%s1790_s1 + $0x208] ss:$16 sps:$4 sm:$0xff]  }
  0x18   :  { %825 = vmatprep.subr.bf16.mxu0 %v1177_v24  ;;  %907 = vmatprep.subr.bf16.mxu1 %v1179_v25  ;;  %v19_v5 = vpack.c.bf16 %v15_v2, %v15_v2  ;;  %v1237_v6 = vld [vmem:[%s1790_s1 + $0x200] ss:$16 sps:$4 sm:$0xff]   ;;  %v1245_v8 = vld [vmem:[%s1790_s1 + $0x224] ss:$16 sps:$4 sm:$0xff]   ;;  %v1248_v9 = vld [vmem:[%s1790_s1 + $0x22c] ss:$16 sps:$4 sm:$0xff]  }
  0x19   :  { %v1243_v10 = vld [vmem:[%s1790_s1 + $0x220] ss:$16 sps:$4 sm:$0xff]   ;;  %v1246_v11 = vld [vmem:[%s1790_s1 + $0x228] ss:$16 sps:$4 sm:$0xff]   ;;  %v1251_v12 = vld [vmem:[%s1790_s1 + $0x244] ss:$16 sps:$4 sm:$0xff]  }
  0x1a   :  { %v1254_v13 = vld [vmem:[%s1790_s1 + $0x24c] ss:$16 sps:$4 sm:$0xff]   ;;  %v1249_v14 = vld [vmem:[%s1790_s1 + $0x240] ss:$16 sps:$4 sm:$0xff]   ;;  %v1252_v15 = vld [vmem:[%s1790_s1 + $0x248] ss:$16 sps:$4 sm:$0xff]  }
  0x1b   :  { %826 = vmatpush1.bf16.msra.mxu0 %v1181_v26  ;;  %908 = vmatpush1.bf16.msra.mxu1 %v1182_v27  ;;  %v1257_v16 = vld [vmem:[%s1790_s1 + $0x264] ss:$16 sps:$4 sm:$0xff]   ;;  %v1260_v17 = vld [vmem:[%s1790_s1 + $0x26c] ss:$16 sps:$4 sm:$0xff]   ;;  %v1255_v18 = vld [vmem:[%s1790_s1 + $0x260] ss:$16 sps:$4 sm:$0xff]  }
  0x1c   :  { %827 = vmatprep.subr.bf16.mxu0 %v1183_v28  ;;  %909 = vmatprep.subr.bf16.mxu1 %v1185_v29  ;;  %v1258_v19 = vld [vmem:[%s1790_s1 + $0x268] ss:$16 sps:$4 sm:$0xff]   ;;  %v1263_v20 = vld [vmem:[%s1790_s1 + $0x284] ss:$16 sps:$4 sm:$0xff]   ;;  %v1266_v21 = vld [vmem:[%s1790_s1 + $0x28c] ss:$16 sps:$4 sm:$0xff]  }
  0x1d   :  { %v1261_v22 = vld [vmem:[%s1790_s1 + $0x280] ss:$16 sps:$4 sm:$0xff]   ;;  %v1264_v23 = vld [vmem:[%s1790_s1 + $0x288] ss:$16 sps:$4 sm:$0xff]   ;;  %v1269_v24 = vld [vmem:[%s1790_s1 + $0x2a4] ss:$16 sps:$4 sm:$0xff]  }
  0x1e   :  { %v1272_v25 = vld [vmem:[%s1790_s1 + $0x2ac] ss:$16 sps:$4 sm:$0xff]   ;;  %v1267_v26 = vld [vmem:[%s1790_s1 + $0x2a0] ss:$16 sps:$4 sm:$0xff]   ;;  %v1270_v27 = vld [vmem:[%s1790_s1 + $0x2a8] ss:$16 sps:$4 sm:$0xff]  }
  0x1f   :  { %828 = vmatpush1.bf16.msra.mxu0 %v1187_v30  ;;  %910 = vmatpush1.bf16.msra.mxu1 %v1188_v31  ;;  %v1275_v28 = vld [vmem:[%s1790_s1 + $0x2c4] ss:$16 sps:$4 sm:$0xff]   ;;  %v1278_v29 = vld [vmem:[%s1790_s1 + $0x2cc] ss:$16 sps:$4 sm:$0xff]  }
  0x20   :  { %829 = vmatprep.subr.bf16.mxu0 %v1189_v32  ;;  %911 = vmatprep.subr.bf16.mxu1 %v1191_v33  ;;  %v18_v30 = vld [vmem:[%s1789_s0 + $0x18] sm:$0xff] }
  0x21   :  { %v22_v31 = vpack.c.bf16 %v18_v30, %v18_v30 }
  0x23   :  { %830 = vmatpush1.bf16.msra.mxu0 %v1193_v34  ;;  %912 = vmatpush1.bf16.msra.mxu1 %v1194_v35 }
  0x24   :  { %831 = vmatprep.subr.bf16.mxu0 %v1195_v36  ;;  %913 = vmatprep.subr.bf16.mxu1 %v1197_v37 }
  0x27   :  { %832 = vmatpush1.bf16.msra.mxu0 %v1199_v38  ;;  %914 = vmatpush1.bf16.msra.mxu1 %v1200_v39 }
  0x28   :  { %833 = vmatprep.subr.bf16.mxu0 %v1201_v40  ;;  %915 = vmatprep.subr.bf16.mxu1 %v1203_v41 }
  0x2b   :  { %834 = vmatpush1.bf16.msra.mxu0 %v1205_v42  ;;  %916 = vmatpush1.bf16.msra.mxu1 %v1206_v43 }
  0x2c   :  { %835 = vmatprep.subr.bf16.mxu0 %v1207_v44  ;;  %917 = vmatprep.subr.bf16.mxu1 %v1209_v45 }
  0x2f   :  { %836 = vmatpush1.bf16.msra.mxu0 %v1211_v47  ;;  %918 = vmatpush1.bf16.msra.mxu1 %v1212_v49 }
  0x30   :  { %837 = vmatprep.subr.bf16.mxu0 %v1213_v50  ;;  %919 = vmatprep.subr.bf16.mxu1 %v1215_v51 }
  0x33   :  { %838 = vmatpush1.bf16.msra.mxu0 %v1217_v52  ;;  %920 = vmatpush1.bf16.msra.mxu1 %v1218_v53 }
  0x34   :  { %839 = vmatprep.subr.bf16.mxu0 %v1219_v54  ;;  %921 = vmatprep.subr.bf16.mxu1 %v1221_v55 }
  0x37   :  { %840 = vmatpush1.bf16.msra.mxu0 %v1223_v56  ;;  %922 = vmatpush1.bf16.msra.mxu1 %v1224_v57 }
  0x38   :  { %841 = vmatprep.subr.bf16.mxu0 %v1225_v58  ;;  %923 = vmatprep.subr.bf16.mxu1 %v1227_v59 }
  0x3b   :  { %842 = vmatpush1.bf16.msra.mxu0 %v1229_v60  ;;  %924 = vmatpush1.bf16.msra.mxu1 %v1230_v61 }
  0x3c   :  { %843 = vmatprep.subr.bf16.mxu0 %v1231_v62  ;;  %925 = vmatprep.subr.bf16.mxu1 %v1233_v63 }
  0x3f   :  { %844 = vmatpush1.bf16.msra.mxu0 %v1235_v0  ;;  %926 = vmatpush1.bf16.msra.mxu1 %v1236_v1 }
  0x40   :  { %854 = vmatprep.subr.bf16.mxu0 %v1239_v3  ;;  %936 = vmatprep.subr.bf16.mxu1 %v1242_v4 }
  0x42   :  { %846 = vmatmul.mubr.bf16.vlgmr.msra.gmra.mrb[0].mxu0 %v19_v5  ;;  %928 = vmatmul.mubr.bf16.vlgmr.msra.gmra.mrb[0].mxu1 %v19_v5 }
  0x43   :  { %855 = vmatpush1.bf16.msra.mxu0 %v1237_v6  ;;  %937 = vmatpush1.bf16.msra.mxu1 %v1240_v7 }
  0x44   :  { %856 = vmatprep.subr.bf16.mxu0 %v1245_v8  ;;  %938 = vmatprep.subr.bf16.mxu1 %v1248_v9 }
  0x47   :  { %857 = vmatpush1.bf16.msra.mxu0 %v1243_v10  ;;  %939 = vmatpush1.bf16.msra.mxu1 %v1246_v11 }
  0x48   :  { %858 = vmatprep.subr.bf16.mxu0 %v1251_v12  ;;  %940 = vmatprep.subr.bf16.mxu1 %v1254_v13 }
  0x4b   :  { %859 = vmatpush1.bf16.msra.mxu0 %v1249_v14  ;;  %941 = vmatpush1.bf16.msra.mxu1 %v1252_v15 }
  0x4c   :  { %860 = vmatprep.subr.bf16.mxu0 %v1257_v16  ;;  %942 = vmatprep.subr.bf16.mxu1 %v1260_v17 }
  0x4f   :  { %861 = vmatpush1.bf16.msra.mxu0 %v1255_v18  ;;  %943 = vmatpush1.bf16.msra.mxu1 %v1258_v19 }
  0x50   :  { %862 = vmatprep.subr.bf16.mxu0 %v1263_v20  ;;  %944 = vmatprep.subr.bf16.mxu1 %v1266_v21 }
  0x53   :  { %863 = vmatpush1.bf16.msra.mxu0 %v1261_v22  ;;  %945 = vmatpush1.bf16.msra.mxu1 %v1264_v23 }
  0x54   :  { %864 = vmatprep.subr.bf16.mxu0 %v1269_v24  ;;  %946 = vmatprep.subr.bf16.mxu1 %v1272_v25 }
  0x55   :  { %8 = vsyncpa [#allocation3], 0  ;;  %v1273_v32 = vld [vmem:[%s1790_s1 + $0x2c0] ss:$16 sps:$4 sm:$0xff]   ;;  %v1276_v33 = vld [vmem:[%s1790_s1 + $0x2c8] ss:$16 sps:$4 sm:$0xff]   ;;  %886 = vmatprep.mubr.bf16.mxu0 %v22_v31  ;;  %968 = vmatprep.mubr.bf16.mxu1 %v22_v31  ;;  %v153_v8 = vlaneseq }
  0x56   :  { %v1281_v34 = vld [vmem:[%s1790_s1 + $0x2e4] ss:$16 sps:$4 sm:$0xff]   ;;  %v1284_v35 = vld [vmem:[%s1790_s1 + $0x2ec] ss:$16 sps:$4 sm:$0xff]   ;;  %v1279_v36 = vld [vmem:[%s1790_s1 + $0x2e0] ss:$16 sps:$4 sm:$0xff]  }
  0x57   :  { %865 = vmatpush1.bf16.msra.mxu0 %v1267_v26  ;;  %947 = vmatpush1.bf16.msra.mxu1 %v1270_v27  ;;  %v1282_v37 = vld [vmem:[%s1790_s1 + $0x2e8] ss:$16 sps:$4 sm:$0xff]   ;;  %v1287_v38 = vld [vmem:[%s1790_s1 + $0x304] ss:$16 sps:$4 sm:$0xff]   ;;  %v1290_v39 = vld [vmem:[%s1790_s1 + $0x30c] ss:$16 sps:$4 sm:$0xff]  }
  0x58   :  { %866 = vmatprep.subr.bf16.mxu0 %v1275_v28  ;;  %948 = vmatprep.subr.bf16.mxu1 %v1278_v29  ;;  %v1285_v40 = vld [vmem:[%s1790_s1 + $0x300] ss:$16 sps:$4 sm:$0xff]   ;;  %v1288_v41 = vld [vmem:[%s1790_s1 + $0x308] ss:$16 sps:$4 sm:$0xff]   ;;  %v1293_v42 = vld [vmem:[%s1790_s1 + $0x324] ss:$16 sps:$4 sm:$0xff]  }
  0x59   :  { %v1296_v43 = vld [vmem:[%s1790_s1 + $0x32c] ss:$16 sps:$4 sm:$0xff]   ;;  %v1291_v44 = vld [vmem:[%s1790_s1 + $0x320] ss:$16 sps:$4 sm:$0xff]   ;;  %v1294_v45 = vld [vmem:[%s1790_s1 + $0x328] ss:$16 sps:$4 sm:$0xff]  }
  0x5a   :  { %v1299_v46 = vld [vmem:[%s1790_s1 + $0x344] ss:$16 sps:$4 sm:$0xff]   ;;  %v1302_v47 = vld [vmem:[%s1790_s1 + $0x34c] ss:$16 sps:$4 sm:$0xff]   ;;  %v1297_v48 = vld [vmem:[%s1790_s1 + $0x340] ss:$16 sps:$4 sm:$0xff]  }
  0x5b   :  { %867 = vmatpush1.bf16.msra.mxu0 %v1273_v32  ;;  %949 = vmatpush1.bf16.msra.mxu1 %v1276_v33  ;;  %v1300_v49 = vld [vmem:[%s1790_s1 + $0x348] ss:$16 sps:$4 sm:$0xff]   ;;  %v1305_v50 = vld [vmem:[%s1790_s1 + $0x364] ss:$16 sps:$4 sm:$0xff]   ;;  %v1308_v51 = vld [vmem:[%s1790_s1 + $0x36c] ss:$16 sps:$4 sm:$0xff]  }
  0x5c   :  { %868 = vmatprep.subr.bf16.mxu0 %v1281_v34  ;;  %950 = vmatprep.subr.bf16.mxu1 %v1284_v35  ;;  %v1303_v52 = vld [vmem:[%s1790_s1 + $0x360] ss:$16 sps:$4 sm:$0xff]   ;;  %v1306_v53 = vld [vmem:[%s1790_s1 + $0x368] ss:$16 sps:$4 sm:$0xff]   ;;  %v1311_v54 = vld [vmem:[%s1790_s1 + $0x384] ss:$16 sps:$4 sm:$0xff]  }
  0x5d   :  { %v1314_v55 = vld [vmem:[%s1790_s1 + $0x38c] ss:$16 sps:$4 sm:$0xff]   ;;  %v1309_v56 = vld [vmem:[%s1790_s1 + $0x380] ss:$16 sps:$4 sm:$0xff]   ;;  %v1312_v57 = vld [vmem:[%s1790_s1 + $0x388] ss:$16 sps:$4 sm:$0xff]  }
  0x5e   :  { %v1317_v58 = vld [vmem:[%s1790_s1 + $0x3a4] ss:$16 sps:$4 sm:$0xff]   ;;  %v1320_v59 = vld [vmem:[%s1790_s1 + $0x3ac] ss:$16 sps:$4 sm:$0xff]   ;;  %v1315_v60 = vld [vmem:[%s1790_s1 + $0x3a0] ss:$16 sps:$4 sm:$0xff]  }
  0x5f   :  { %869 = vmatpush1.bf16.msra.mxu0 %v1279_v36  ;;  %951 = vmatpush1.bf16.msra.mxu1 %v1282_v37  ;;  %v1318_v61 = vld [vmem:[%s1790_s1 + $0x3a8] ss:$16 sps:$4 sm:$0xff]   ;;  %v1323_v62 = vld [vmem:[%s1790_s1 + $0x3c4] ss:$16 sps:$4 sm:$0xff]   ;;  %v1326_v63 = vld [vmem:[%s1790_s1 + $0x3cc] ss:$16 sps:$4 sm:$0xff]  }
  0x60   :  { %870 = vmatprep.subr.bf16.mxu0 %v1287_v38  ;;  %952 = vmatprep.subr.bf16.mxu1 %v1290_v39  ;;  %v1321_v0 = vld [vmem:[%s1790_s1 + $0x3c0] ss:$16 sps:$4 sm:$0xff]   ;;  %v1324_v1 = vld [vmem:[%s1790_s1 + $0x3c8] ss:$16 sps:$4 sm:$0xff]   ;;  %v1329_v2 = vld [vmem:[%s1790_s1 + $0x3e4] ss:$16 sps:$4 sm:$0xff]  }
  0x61   :  { %v1332_v3 = vld [vmem:[%s1790_s1 + $0x3ec] ss:$16 sps:$4 sm:$0xff]   ;;  %v1327_v4 = vld [vmem:[%s1790_s1 + $0x3e0] ss:$16 sps:$4 sm:$0xff]   ;;  %v1330_v5 = vld [vmem:[%s1790_s1 + $0x3e8] ss:$16 sps:$4 sm:$0xff]  }
  0x62   :  { %v17_v6 = vld [vmem:[%s1789_s0 + $0x10] sm:$0xff]  ;;  %v154_v9 = vshrl.u32 %v153_v8, 7  ;;  %v151_v12 = vld [vmem:[%s1791_s2] sm:$0xf]  ;;  %s1357_s0 = smov [#allocation2]   ;;  %vm984_vm0 = vcmask 130048  }
  0x63   :  { %871 = vmatpush1.bf16.msra.mxu0 %v1285_v40  ;;  %953 = vmatpush1.bf16.msra.mxu1 %v1288_v41  ;;  %v21_v7 = vpack.c.bf16 %v17_v6, %v17_v6  ;;  %s992_s1 = sshll.u32 %s1357_s0, 4  ;;  %s993_s1 = int_to_ptr.vmem [resolvable:$true] %s992_s1 }
  0x64   :  { %872 = vmatprep.subr.bf16.mxu0 %v1293_v42  ;;  %954 = vmatprep.subr.bf16.mxu1 %v1296_v43  ;;  %v155_v10 = vsub.s32 0, %v154_v9  ;;  %v163_v11 = vsub.s32 2, %v154_v9  ;;  %v159_v13 = vsub.s32 1, %v154_v9  ;;  %v167_v14 = vsub.s32 3, %v154_v9  ;;  %s1333_s2 = scalar_lea.vmem %s993_s1, 512  ;;  %p1338_p1 = scmp.lt.s32.totalorder %s993_s1, %s993_s1 }
  0x65   :  { %p1334_p0 = scmp.ne.s32.totalorder %s993_s1, %s1333_s2  ;;  %p1339_p2 = scmp.lt.s32.totalorder %s1333_s2, %s1333_s2 }
  0x66   :  { %v156_v15 = vrot.slane %v151_v12, %v155_v10  ;;  %v164_v16 = vrot.slane %v151_v12, %v163_v11  ;;  %v160_v17 = vrot.slane %v151_v12, %v159_v13  ;;  %v168_v18 = vrot.slane %v151_v12, %v167_v14 }
  0x67   :  { %873 = vmatpush1.bf16.msra.mxu0 %v1291_v44  ;;  %955 = vmatpush1.bf16.msra.mxu1 %v1294_v45  ;;  %p1340_p3 = por %p1339_p2, %p1338_p1 }
  0x68   :  { %874 = vmatprep.subr.bf16.mxu0 %v1299_v46  ;;  %956 = vmatprep.subr.bf16.mxu1 %v1302_v47 }
  0x69   :  { %p1341_p4 = pnand %p1340_p3, %p1334_p0 }
  0x6b   :  { %875 = vmatpush1.bf16.msra.mxu0 %v1297_v48  ;;  %957 = vmatpush1.bf16.msra.mxu1 %v1300_v49 }
  0x6c   :  { %876 = vmatprep.subr.bf16.mxu0 %v1305_v50  ;;  %958 = vmatprep.subr.bf16.mxu1 %v1308_v51 }
  0x6f   :  { %877 = vmatpush1.bf16.msra.mxu0 %v1303_v52  ;;  %959 = vmatpush1.bf16.msra.mxu1 %v1306_v53 }
  0x70   :  { %878 = vmatprep.subr.bf16.mxu0 %v1311_v54  ;;  %960 = vmatprep.subr.bf16.mxu1 %v1314_v55 }
  0x73   :  { %879 = vmatpush1.bf16.msra.mxu0 %v1309_v56  ;;  %961 = vmatpush1.bf16.msra.mxu1 %v1312_v57 }
  0x74   :  { %880 = vmatprep.subr.bf16.mxu0 %v1317_v58  ;;  %962 = vmatprep.subr.bf16.mxu1 %v1320_v59 }
  0x77   :  { %881 = vmatpush1.bf16.msra.mxu0 %v1315_v60  ;;  %963 = vmatpush1.bf16.msra.mxu1 %v1318_v61 }
  0x78   :  { %882 = vmatprep.subr.bf16.mxu0 %v1323_v62  ;;  %964 = vmatprep.subr.bf16.mxu1 %v1326_v63 }
  0x7b   :  { %883 = vmatpush1.bf16.msra.mxu0 %v1321_v0  ;;  %965 = vmatpush1.bf16.msra.mxu1 %v1324_v1 }
  0x7c   :  { %884 = vmatprep.subr.bf16.mxu0 %v1329_v2  ;;  %966 = vmatprep.subr.bf16.mxu1 %v1332_v3 }
  0x7f   :  { %885 = vmatpush1.bf16.msra.mxu0 %v1327_v4  ;;  %967 = vmatpush1.bf16.msra.mxu1 %v1330_v5 }
  0x82   :  { %887 = vmatmul.mubr.bf16.vlgmr.msra.gmra.mrb[0].mxu0 %v21_v7  ;;  %969 = vmatmul.mubr.bf16.vlgmr.msra.gmra.mrb[0].mxu1 %v21_v7 }
 0x155   :  { %v888_v19 = vpop.f32.mrb[0].mxu0  ;;  %v970_v20 = vpop.f32.mrb[0].mxu1 }
 0x156   :  { %v1128_v21 = vadd.f32 %v888_v19, %v156_v15  ;;  %v1130_v22 = vadd.f32 %v970_v20, %v164_v16  ;;  %v890_v23 = vpop.f32.mrb[1].mxu0  ;;  %v972_v24 = vpop.f32.mrb[1].mxu1 }
 0x157   :  { %v1129_v25 = vadd.f32 %v890_v23, %v160_v17  ;;  %v1131_v26 = vadd.f32 %v972_v24, %v168_v18  ;;  %v892_v27 = vpop.f32.mrb[2].mxu0  ;;  %v974_v28 = vpop.f32.mrb[2].mxu1 }
 0x158   :  { %v977_v29 = vmax.f32 %v1128_v21, 0.0  ;;  %v979_v30 = vmax.f32 %v1130_v22, 0.0  ;;  %v893_v31 = vpop.f32.mrb[3].mxu0  ;;  %v975_v32 = vpop.f32.mrb[3].mxu1 }
 0x159   :  { %v978_v33 = vmax.f32 %v1129_v25, 0.0  ;;  %v980_v34 = vmax.f32 %v1131_v26, 0.0 }
 0x15a   :  { %981 = vst [vmem:[#allocation2] sm:$0xff] %v977_v29  ;;  %983 = vst [vmem:[#allocation2 + $0x10] sm:$0xff] %v979_v30 }
 0x15b   :  { %982 = vst [vmem:[#allocation2 + $0x8] sm:$0xff] %v978_v33  ;;  %985 = vst.msk [vmem:[#allocation2 + $0x18] sm:$0xff] %vm984_vm0, %v980_v34 }
 0x15c   :  { %1344 = shalt.err (!%p1341_p4)
}
 0x15d   :  { %s1345_s10 = scalar_lea.hbm %s1792_s3, 512 }
 0x15e   :  { %p1346_p5 = scmp.ne.s32.totalorder %s1792_s3, %s1345_s10  ;;  %p1349_p6 = scmp.lt.u32.totalorder %s1345_s10, %s1792_s3 }
 0x160   :  { %p1351_p7 = pnand %p1349_p6, %p1346_p5 }
 0x162   :  { %1354 = shalt.err (!%p1351_p7)
}
 0x163   :  { %995 = dma.vmem_to_hbm [thread:$0]  %s993_s1, 512, %s1792_s3, [#allocation3]  }
 0x164   :  { %1355 = dma.done.wait [#allocation3], 512  }
 0x165   :  { %1356 = vsyncadd [#allocation3], 4294966784 }
 0x166   :  { %999 = vsyncpa [#allocation3], 1 }

</bundles_post_ra>
